<compile_context>
chip_gen: v6e
topology: v6e:2x2x1
jax: 0.10.0
libtpu: 0.0.40
codegen_flags: <defaults>
</compile_context>

<pallas_src>
import functools

import jax
import jax.numpy as jnp
from jax.experimental import pallas as pl
from jax.experimental.pallas import tpu as pltpu

INPUT_SIZE = 171
INTER_1 = 159
INTER_2 = 128
OUTPUT_SIZE = 96
OUT_PAD = 128  # lane-dense padded output width (>= OUTPUT_SIZE, multiple of 128)


def _mlp_kernel(x_ref, w1_ref, b1_ref, w2_ref, b2_ref, w3_ref, b3_ref, o_ref):
    # Layer 1: Linear(171 -> 159) + ReLU
    h1 = jnp.dot(x_ref[...], w1_ref[...], preferred_element_type=jnp.float32)
    h1 = jnp.maximum(h1 + b1_ref[...], 0.0)
    # Layer 2: Linear(159 -> 128) + ReLU
    h2 = jnp.dot(h1, w2_ref[...], preferred_element_type=jnp.float32)
    h2 = jnp.maximum(h2 + b2_ref[...], 0.0)
    # Layer 3: Linear(128 -> 128 padded; real outputs live in columns [0:96])
    out = jnp.dot(h2, w3_ref[...], preferred_element_type=jnp.float32)
    o_ref[...] = (out + b3_ref[...]).astype(o_ref.dtype)


def _round_up(n, m):
    return ((n + m - 1) // m) * m


@functools.partial(jax.jit, static_argnames=("block_b",))
def sparse_point_assoc_forward(x, params, *, block_b=512):
    """x: [B, 171] float32. params: dict w1,b1,w2,b2,w3,b3 (see init_params)."""
    B, F = x.shape
    assert F == INPUT_SIZE

    # Effective batch tile: multiple of 8, never larger than the (rounded-up)
    # batch, and capped so the grid has >= 2 programs when B allows it.
    bb = min(block_b, _round_up(B, 8))
    if B >= 16:
        bb = min(bb, _round_up(pl.cdiv(B, 2), 8))
    bb = max(bb, 8)

    # Pad the batch so bb can be chosen independently of B; padded rows are
    # junk (bias-only) and are sliced off below.
    B_pad = _round_up(B, bb)
    x_pad = jnp.pad(x, ((0, B_pad - B), (0, 0))) if B_pad != B else x

    # Lane-dense output: zero-pad w3 / b3 to 128 output columns. Padded
    # columns of the weights/bias are exact zeros, so the first 96 columns of
    # the result are bit-identical to the unpadded computation.
    w3p = jnp.pad(params["w3"], ((0, 0), (0, OUT_PAD - OUTPUT_SIZE)))
    b3p = jnp.pad(params["b3"], ((0, 0), (0, OUT_PAD - OUTPUT_SIZE)))

    grid = (B_pad // bb,)
    full = lambda shape: pl.BlockSpec(shape, lambda i: (0, 0))  # resident operand

    out_padded = pl.pallas_call(
        _mlp_kernel,
        out_shape=jax.ShapeDtypeStruct((B_pad, OUT_PAD), jnp.float32),
        grid_spec=pltpu.PrefetchScalarGridSpec(
            num_scalar_prefetch=0,
            grid=grid,
            in_specs=[
                pl.BlockSpec((bb, INPUT_SIZE), lambda i: (i, 0)),  # x tile (streams)
                full((INPUT_SIZE, INTER_1)),     # w1 (resident in VMEM)
                full((1, INTER_1)),              # b1
                full((INTER_1, INTER_2)),        # w2
                full((1, INTER_2)),              # b2
                full((INTER_2, OUT_PAD)),        # w3 (padded to 128 lanes)
                full((1, OUT_PAD)),              # b3 (padded to 128 lanes)
            ],
            out_specs=pl.BlockSpec((bb, OUT_PAD), lambda i: (i, 0)),
        ),
        compiler_params=pltpu.CompilerParams(
            dimension_semantics=("parallel",),
        ),
    )(x_pad, params["w1"], params["b1"], params["w2"], params["b2"], w3p, b3p)

    # Strip the row padding and the lane padding.
    return out_padded[:B, :OUTPUT_SIZE]


def init_params(key):
    """Deterministic init mimicking nn.Linear's U(-1/sqrt(fan_in), 1/sqrt(fan_in))."""
    def linear_init(k, fan_in, fan_out):
        kw, kb = jax.random.split(k)
        bound = 1.0 / jnp.sqrt(jnp.float32(fan_in))
        # Stored as [in, out] (transposed vs PyTorch's [out, in]).
        w = jax.random.uniform(kw, (fan_in, fan_out), jnp.float32, -bound, bound)
        b = jax.random.uniform(kb, (1, fan_out), jnp.float32, -bound, bound)
        return w, b

    k1, k2, k3 = jax.random.split(key, 3)
    w1, b1 = linear_init(k1, INPUT_SIZE, INTER_1)
    w2, b2 = linear_init(k2, INTER_1, INTER_2)
    w3, b3 = linear_init(k3, INTER_2, OUTPUT_SIZE)
    return dict(w1=w1, b1=b1, w2=w2, b2=b2, w3=w3, b3=b3)


def reference_forward(x, p):
    h1 = jnp.maximum(x @ p["w1"] + p["b1"], 0.0)
    h2 = jnp.maximum(h1 @ p["w2"] + p["b2"], 0.0)
    return h2 @ p["w3"] + p["b3"]


if __name__ == "__main__":
    key = jax.random.PRNGKey(0)
    kx, kp = jax.random.split(key)

    # Small batch of "points"; deliberately NOT a multiple of 8 / the tile size
    # so the ragged-batch (pad + slice) path is exercised.
    B = 200
    x = jax.random.normal(kx, (B, INPUT_SIZE), dtype=jnp.float32)
    params = init_params(kp)

    out = sparse_point_assoc_forward(x, params)
    out = jax.block_until_ready(out)

    ref = reference_forward(x, params)
    assert out.shape == (B, OUTPUT_SIZE)
    assert jnp.allclose(out, ref, atol=1e-4, rtol=1e-4), "mismatch vs reference"

    print("KERNEL_OK")
</pallas_src>

<mosaic_0001>
module attributes {stable_mosaic.version = 11 : i64} {
  func.func @_mlp_kernel(%arg0: i32, %arg1: memref<104x171xf32, #tpu.memory_space<vmem>>, %arg2: memref<171x159xf32, #tpu.memory_space<vmem>>, %arg3: memref<1x159xf32, #tpu.memory_space<vmem>>, %arg4: memref<159x128xf32, #tpu.memory_space<vmem>>, %arg5: memref<1x128xf32, #tpu.memory_space<vmem>>, %arg6: memref<128x128xf32, #tpu.memory_space<vmem>>, %arg7: memref<1x128xf32, #tpu.memory_space<vmem>>, %arg8: memref<104x128xf32, #tpu.memory_space<vmem>>) attributes {dimension_semantics = [#tpu.dimension_semantics<parallel>], iteration_bounds = array<i64: 2>, scalar_prefetch = 0 : i64, scratch_operands = 0 : i64, tpu.core_type = #tpu.core_type<tc>, window_params = [{transform_indices = @transform_0, window_bounds = array<i64: 104, 171>}, {pipeline_mode = #tpu.pipeline_mode<synchronous>, transform_indices = @transform_1, window_bounds = array<i64: 171, 159>}, {pipeline_mode = #tpu.pipeline_mode<synchronous>, transform_indices = @transform_2, window_bounds = array<i64: 1, 159>}, {pipeline_mode = #tpu.pipeline_mode<synchronous>, transform_indices = @transform_3, window_bounds = array<i64: 159, 128>}, {pipeline_mode = #tpu.pipeline_mode<synchronous>, transform_indices = @transform_4, window_bounds = array<i64: 1, 128>}, {pipeline_mode = #tpu.pipeline_mode<synchronous>, transform_indices = @transform_5, window_bounds = array<i64: 128, 128>}, {pipeline_mode = #tpu.pipeline_mode<synchronous>, transform_indices = @transform_6, window_bounds = array<i64: 1, 128>}, {transform_indices = @transform_7, window_bounds = array<i64: 104, 128>}]} {
    %c0 = arith.constant 0 : index
    %c0_0 = arith.constant 0 : index
    %0 = vector.load %arg1[%c0, %c0_0] : memref<104x171xf32, #tpu.memory_space<vmem>>, vector<104x171xf32>
    %c0_1 = arith.constant 0 : index
    %c0_2 = arith.constant 0 : index
    %1 = vector.load %arg2[%c0_1, %c0_2] : memref<171x159xf32, #tpu.memory_space<vmem>>, vector<171x159xf32>
    %cst = arith.constant dense<0.000000e+00> : vector<104x159xf32>
    %2 = tpu.matmul %0, %1, %cst {dimension_numbers = #tpu.dot_dimension_numbers<[1], [0], [0], [1], [0, 0, 1, 1], [], []>} : vector<104x171xf32>, vector<171x159xf32>, vector<104x159xf32> -> vector<104x159xf32>
    %c0_3 = arith.constant 0 : index
    %c0_4 = arith.constant 0 : index
    %3 = vector.load %arg3[%c0_3, %c0_4] : memref<1x159xf32, #tpu.memory_space<vmem>>, vector<1x159xf32>
    %4 = vector.broadcast %3 : vector<1x159xf32> to vector<104x159xf32>
    %5 = arith.addf %2, %4 : vector<104x159xf32>
    %cst_5 = arith.constant 0.000000e+00 : f32
    %6 = vector.broadcast %cst_5 : f32 to vector<104x159xf32>
    %7 = arith.maximumf %5, %6 : vector<104x159xf32>
    %c0_6 = arith.constant 0 : index
    %c0_7 = arith.constant 0 : index
    %8 = vector.load %arg4[%c0_6, %c0_7] : memref<159x128xf32, #tpu.memory_space<vmem>>, vector<159x128xf32>
    %cst_8 = arith.constant dense<0.000000e+00> : vector<104x128xf32>
    %9 = tpu.matmul %7, %8, %cst_8 {dimension_numbers = #tpu.dot_dimension_numbers<[1], [0], [0], [1], [0, 0, 1, 1], [], []>} : vector<104x159xf32>, vector<159x128xf32>, vector<104x128xf32> -> vector<104x128xf32>
    %c0_9 = arith.constant 0 : index
    %c0_10 = arith.constant 0 : index
    %10 = vector.load %arg5[%c0_9, %c0_10] : memref<1x128xf32, #tpu.memory_space<vmem>>, vector<1x128xf32>
    %11 = vector.broadcast %10 : vector<1x128xf32> to vector<104x128xf32>
    %12 = arith.addf %9, %11 : vector<104x128xf32>
    %cst_11 = arith.constant 0.000000e+00 : f32
    %13 = vector.broadcast %cst_11 : f32 to vector<104x128xf32>
    %14 = arith.maximumf %12, %13 : vector<104x128xf32>
    %c0_12 = arith.constant 0 : index
    %c0_13 = arith.constant 0 : index
    %15 = vector.load %arg6[%c0_12, %c0_13] : memref<128x128xf32, #tpu.memory_space<vmem>>, vector<128x128xf32>
    %cst_14 = arith.constant dense<0.000000e+00> : vector<104x128xf32>
    %16 = tpu.matmul %14, %15, %cst_14 {dimension_numbers = #tpu.dot_dimension_numbers<[1], [0], [0], [1], [0, 0, 1, 1], [], []>} : vector<104x128xf32>, vector<128x128xf32>, vector<104x128xf32> -> vector<104x128xf32>
    %c0_15 = arith.constant 0 : index
    %c0_16 = arith.constant 0 : index
    %17 = vector.load %arg7[%c0_15, %c0_16] : memref<1x128xf32, #tpu.memory_space<vmem>>, vector<1x128xf32>
    %18 = vector.broadcast %17 : vector<1x128xf32> to vector<104x128xf32>
    %19 = arith.addf %16, %18 : vector<104x128xf32>
    %c0_17 = arith.constant 0 : index
    %c0_18 = arith.constant 0 : index
    %20 = vector.load %arg8[%c0_17, %c0_18] : memref<104x128xf32, #tpu.memory_space<vmem>>, vector<104x128xf32>
    tpu.vector_store %arg8[%c0_17, %c0_18], %19 {strides = array<i32>} : memref<104x128xf32, #tpu.memory_space<vmem>>, vector<104x128xf32>,
    return
  }
  func.func @transform_0(%arg0: i32) -> (i32, i32) {
    %c0_i32 = arith.constant 0 : i32
    %c0_i32_0 = arith.constant 0 : i32
    return %arg0, %c0_i32 : i32, i32
  }
  func.func @transform_1(%arg0: i32) -> (i32, i32) {
    %c0_i32 = arith.constant 0 : i32
    %c0_i32_0 = arith.constant 0 : i32
    %c0_i32_1 = arith.constant 0 : i32
    return %c0_i32, %c0_i32_0 : i32, i32
  }
  func.func @transform_2(%arg0: i32) -> (i32, i32) {
    %c0_i32 = arith.constant 0 : i32
    %c0_i32_0 = arith.constant 0 : i32
    %c0_i32_1 = arith.constant 0 : i32
    return %c0_i32, %c0_i32_0 : i32, i32
  }
  func.func @transform_3(%arg0: i32) -> (i32, i32) {
    %c0_i32 = arith.constant 0 : i32
    %c0_i32_0 = arith.constant 0 : i32
    %c0_i32_1 = arith.constant 0 : i32
    return %c0_i32, %c0_i32_0 : i32, i32
  }
  func.func @transform_4(%arg0: i32) -> (i32, i32) {
    %c0_i32 = arith.constant 0 : i32
    %c0_i32_0 = arith.constant 0 : i32
    %c0_i32_1 = arith.constant 0 : i32
    return %c0_i32, %c0_i32_0 : i32, i32
  }
  func.func @transform_5(%arg0: i32) -> (i32, i32) {
    %c0_i32 = arith.constant 0 : i32
    %c0_i32_0 = arith.constant 0 : i32
    %c0_i32_1 = arith.constant 0 : i32
    return %c0_i32, %c0_i32_0 : i32, i32
  }
  func.func @transform_6(%arg0: i32) -> (i32, i32) {
    %c0_i32 = arith.constant 0 : i32
    %c0_i32_0 = arith.constant 0 : i32
    %c0_i32_1 = arith.constant 0 : i32
    return %c0_i32, %c0_i32_0 : i32, i32
  }
  func.func @transform_7(%arg0: i32) -> (i32, i32) {
    %c0_i32 = arith.constant 0 : i32
    %c0_i32_0 = arith.constant 0 : i32
    return %arg0, %c0_i32 : i32, i32
  }
}

</mosaic_0001>

<bundles_post_ra>
// kernel: sparse_point_assoc_forward.1
= control target key start
LH: loop header
LB: loop body
LE: loop exit
PB: predicated region body
PF: predicated region fallthrough
CT: control target
= control target key end

     0   :  { %s1253_s24 = smov 0   ;;  %s1763_s0 = inlined_call_operand.vmem [shape: f32[208,171], index: 0, kind: input, shape index: {}]   ;;  %s1764_s1 = inlined_call_operand.vmem [shape: f32[171,159], index: 1, kind: input, shape index: {}]   ;;  %s1765_s2 = inlined_call_operand.vmem [shape: f32[1,159], index: 2, kind: input, shape index: {}]   ;;  %s1766_s3 = inlined_call_operand.vmem [shape: f32[159,128], index: 3, kind: input, shape index: {}]   ;;  %s1767_s4 = inlined_call_operand.vmem [shape: f32[1,128], index: 4, kind: input, shape index: {}]   ;;  %s1768_s5 = inlined_call_operand.vmem [shape: f32[128,128], index: 5, kind: input, shape index: {}]   ;;  %s1769_s6 = inlined_call_operand.vmem [shape: f32[1,128], index: 6, kind: input, shape index: {}]   ;;  %s1770_s7 = inlined_call_operand.vmem [shape: f32[208,128], index: 7, kind: output, shape index: {}]  }
   0x1 LB: > { %s1019_s25 = sadd.s32 4294967295, %s1209_s24   ;;  %p1023_p0 = scmp.ge.s32.totalorder %s1209_s24, 1  ;;  %s1209_s24 = sphi %s1253_s24, %s17_s24  }
   0x2   : > { %p239_p1 = scmp.lt.s32.totalorder %s1209_s24, 3 }
   0x4   : > { %p240_p2 = pnand %p1023_p0, %p239_p1 }
   0x5   : > { %s272_s9 = smul.u32 (!%p240_p2), 13, %s1019_s25 }
   0x6   : > { %243 = sbr.rel (%p240_p2) target bundleno = 697 (0x2b9), region = 48 }
   0x7   : > { %p273_p3 = scmp.lt.s32.totalorder (!%p240_p2), %s272_s9, 25 }
   0xb   : > { %v342_v0 = vld [vmem:[%s1764_s1 + $0xf8] sm:$0xff]  ;;  %v341_v1 = vld [vmem:[%s1764_s1 + $0xf0] sm:$0xff]  ;;  %v340_v2 = vld [vmem:[%s1764_s1 + $0xe8] sm:$0xff]  ;;  %v1211_v5 = vmov 0.0   ;;  %s1772_s9 = smov (!%p273_p3, %s272_s9), 25  ;;  %vm367_vm0 = vcmask 351232  }
   0xc   : > { %414 = vmatprep.subr.mxu0 %v342_v0  ;;  %v339_v3 = vld [vmem:[%s1764_s1 + $0xe0] sm:$0xff]  ;;  %v338_v4 = vld [vmem:[%s1764_s1 + $0xd8] sm:$0xff]  ;;  %654 = vmatprep.subr.mxu1 %v1211_v5  ;;  %v337_v6 = vld [vmem:[%s1764_s1 + $0xd0] sm:$0xff]  ;;  %s1060_s27 = sshll.u32 %s1772_s9, 4  ;;  %vm407_vm1 = vcmask 1042432   ;;  %vm650_vm2 = vcmask 1046528  }
   0xd   : > { %415 = vmatpush1.msra.mxu0 %v341_v1  ;;  %v336_v7 = vld [vmem:[%s1764_s1 + $0xc8] sm:$0xff]  ;;  %v335_v8 = vld [vmem:[%s1764_s1 + $0xc0] sm:$0xff]  ;;  %v334_v9 = vld [vmem:[%s1764_s1 + $0xb8] sm:$0xff]  ;;  %s1310_s14 = scalar_lea.vmem %s1763_s0, %s1060_s27  ;;  %vm610_vm3 = vcmask 252928   ;;  %vm1212_vm4 = vmmov 0   ;;  %s1026_s30 = sshll.u32 %s1772_s9, 3 }
   0xe   : > { %416 = vmatprep.subr.mxu0 %v340_v2  ;;  %v333_v10 = vld [vmem:[%s1764_s1 + $0xb0] sm:$0xff]  ;;  %v332_v11 = vld [vmem:[%s1764_s1 + $0xa8] sm:$0xff]  ;;  %v331_v12 = vld [vmem:[%s1764_s1 + $0xa0] sm:$0xff]  ;;  %s1745_s12 = scalar_lea.vmem %s1770_s7, %s1026_s30 }
   0xf   : > { %417 = vmatpush1.msra.mxu0 %v339_v3  ;;  %v330_v13 = vld [vmem:[%s1764_s1 + $0x98] sm:$0xff]  ;;  %v329_v14 = vld [vmem:[%s1764_s1 + $0x90] sm:$0xff]  ;;  %v328_v15 = vld [vmem:[%s1764_s1 + $0x88] sm:$0xff] }
  0x10   : > { %418 = vmatprep.subr.mxu0 %v338_v4  ;;  %v327_v16 = vld [vmem:[%s1764_s1 + $0x80] sm:$0xff]  ;;  %v326_v17 = vld [vmem:[%s1764_s1 + $0x78] sm:$0xff]  ;;  %v286_v18 = vld [vmem:[%s1310_s14 + $0x8] sm:$0xff] }
  0x11   : > { %419 = vmatpush1.msra.mxu0 %v337_v6  ;;  %v325_v19 = vld [vmem:[%s1764_s1 + $0x70] sm:$0xff]  ;;  %1029 = vmatprep.mubr.msk.f32.mxu0 %vm367_vm0, %v286_v18  ;;  %v324_v20 = vld [vmem:[%s1764_s1 + $0x68] sm:$0xff]  ;;  %v323_v21 = vld [vmem:[%s1764_s1 + $0x60] sm:$0xff] }
  0x12   : > { %420 = vmatprep.subr.mxu0 %v336_v7  ;;  %v322_v22 = vld [vmem:[%s1764_s1 + $0x58] sm:$0xff]  ;;  %v321_v23 = vld [vmem:[%s1764_s1 + $0x50] sm:$0xff]  ;;  %v320_v24 = vld [vmem:[%s1764_s1 + $0x48] sm:$0xff] }
  0x13   : > { %421 = vmatpush1.msra.mxu0 %v335_v8  ;;  %v319_v25 = vld [vmem:[%s1764_s1 + $0x40] sm:$0xff]  ;;  %v318_v26 = vld [vmem:[%s1764_s1 + $0x38] sm:$0xff]  ;;  %v317_v27 = vld [vmem:[%s1764_s1 + $0x30] sm:$0xff] }
  0x14   : > { %422 = vmatprep.subr.mxu0 %v334_v9  ;;  %v598_v28 = vld [vmem:[%s1766_s3 + $0x78] sm:$0xff]  ;;  %v597_v29 = vld [vmem:[%s1766_s3 + $0x70] sm:$0xff]  ;;  %v316_v30 = vld [vmem:[%s1764_s1 + $0x28] sm:$0xff] }
  0x15   : > { %423 = vmatpush1.msra.mxu0 %v333_v10  ;;  %655 = vmatpush1.msra.mxu1 %v598_v28  ;;  %v315_v31 = vld [vmem:[%s1764_s1 + $0x20] sm:$0xff]  ;;  %v596_v32 = vld [vmem:[%s1766_s3 + $0x68] sm:$0xff]  ;;  %v314_v33 = vld [vmem:[%s1764_s1 + $0x18] sm:$0xff] }
  0x16   : > { %424 = vmatprep.subr.mxu0 %v332_v11  ;;  %656 = vmatprep.subr.mxu1 %v1211_v5  ;;  %v313_v34 = vld [vmem:[%s1764_s1 + $0x10] sm:$0xff]  ;;  %v595_v35 = vld [vmem:[%s1766_s3 + $0x60] sm:$0xff]  ;;  %v312_v36 = vld [vmem:[%s1764_s1 + $0x8] sm:$0xff] }
  0x17   : > { %425 = vmatpush1.msra.mxu0 %v331_v12  ;;  %657 = vmatpush1.msra.mxu1 %v597_v29  ;;  %v311_v37 = vld [vmem:[%s1764_s1] sm:$0xff]  ;;  %v594_v38 = vld [vmem:[%s1766_s3 + $0x58] sm:$0xff]  ;;  %v353_v40 = vld [vmem:[%s1764_s1 + $0x150] sm:$0x7] }
  0x18   : > { %426 = vmatprep.subr.mxu0 %v330_v13  ;;  %658 = vmatprep.subr.mxu1 %v1211_v5  ;;  %v354_v39 = vld [vmem:[%s1764_s1 + $0x158] sm:$0x7]  ;;  %v593_v41 = vld [vmem:[%s1766_s3 + $0x50] sm:$0xff]  ;;  %v352_v42 = vld [vmem:[%s1764_s1 + $0x148] sm:$0xff] }
  0x19   : > { %427 = vmatpush1.msra.mxu0 %v329_v14  ;;  %659 = vmatpush1.msra.mxu1 %v596_v32  ;;  %v351_v43 = vld [vmem:[%s1764_s1 + $0x140] sm:$0xff]  ;;  %v592_v44 = vld [vmem:[%s1766_s3 + $0x48] sm:$0xff]  ;;  %v350_v45 = vld [vmem:[%s1764_s1 + $0x138] sm:$0xff] }
  0x1a   : > { %428 = vmatprep.subr.mxu0 %v328_v15  ;;  %660 = vmatprep.subr.mxu1 %v1211_v5  ;;  %v349_v46 = vld [vmem:[%s1764_s1 + $0x130] sm:$0xff]  ;;  %v591_v47 = vld [vmem:[%s1766_s3 + $0x40] sm:$0xff]  ;;  %v348_v48 = vld [vmem:[%s1764_s1 + $0x128] sm:$0xff] }
  0x1b   : > { %429 = vmatpush1.msra.mxu0 %v327_v16  ;;  %661 = vmatpush1.msra.mxu1 %v595_v35  ;;  %v347_v49 = vld [vmem:[%s1764_s1 + $0x120] sm:$0xff]  ;;  %v590_v50 = vld [vmem:[%s1766_s3 + $0x38] sm:$0xff]  ;;  %v345_v52 = vld [vmem:[%s1764_s1 + $0x110] sm:$0xff] }
  0x1c   : > { %430 = vmatprep.subr.mxu0 %v326_v17  ;;  %662 = vmatprep.subr.mxu1 %v1211_v5  ;;  %v346_v51 = vld [vmem:[%s1764_s1 + $0x118] sm:$0xff]  ;;  %v589_v53 = vld [vmem:[%s1766_s3 + $0x30] sm:$0xff]  ;;  %v344_v54 = vld [vmem:[%s1764_s1 + $0x108] sm:$0xff] }
  0x1d   : > { %431 = vmatpush1.msra.mxu0 %v325_v19  ;;  %663 = vmatpush1.msra.mxu1 %v594_v38  ;;  %v343_v55 = vld [vmem:[%s1764_s1 + $0x100] sm:$0xff]  ;;  %v588_v56 = vld [vmem:[%s1766_s3 + $0x28] sm:$0xff]  ;;  %v288_v58 = vld [vmem:[%s1310_s14 + $0x18] sm:$0xff] }
  0x1e   : > { %432 = vmatprep.subr.mxu0 %v324_v20  ;;  %664 = vmatprep.subr.mxu1 %v1211_v5  ;;  %v285_v57 = vld [vmem:[%s1310_s14] sm:$0xff]  ;;  %v586_v60 = vld [vmem:[%s1766_s3 + $0x18] sm:$0xff]  ;;  %v287_v61 = vld [vmem:[%s1310_s14 + $0x10] sm:$0xff] }
  0x1f   : > { %433 = vmatpush1.msra.mxu0 %v323_v21  ;;  %665 = vmatpush1.msra.mxu1 %v593_v41  ;;  %v587_v59 = vld [vmem:[%s1766_s3 + $0x20] sm:$0xff]  ;;  %v290_v62 = vld [vmem:[%s1310_s14 + $0x28] sm:$0xff]  ;;  %v585_v63 = vld [vmem:[%s1766_s3 + $0x10] sm:$0xff]  ;;  %v357_v41 = vlaneseq }
  0x20   : > { %434 = vmatprep.subr.mxu0 %v322_v22  ;;  %666 = vmatprep.subr.mxu1 %v1211_v5  ;;  %v584_v0 = vld [vmem:[%s1766_s3 + $0x8] sm:$0xff]  ;;  %v289_v1 = vld [vmem:[%s1310_s14 + $0x20] sm:$0xff]  ;;  %v292_v2 = vld [vmem:[%s1310_s14 + $0x38] sm:$0xff] }
  0x21   : > { %435 = vmatpush1.msra.mxu0 %v321_v23  ;;  %667 = vmatpush1.msra.mxu1 %v592_v44  ;;  %v583_v3 = vld [vmem:[%s1766_s3] sm:$0xff]  ;;  %v291_v4 = vld [vmem:[%s1310_s14 + $0x30] sm:$0xff]  ;;  %v294_v6 = vld [vmem:[%s1310_s14 + $0x48] sm:$0xff] }
  0x22   : > { %436 = vmatprep.subr.mxu0 %v320_v24  ;;  %668 = vmatprep.subr.mxu1 %v1211_v5  ;;  %v293_v7 = vld [vmem:[%s1310_s14 + $0x40] sm:$0xff]  ;;  %v296_v8 = vld [vmem:[%s1310_s14 + $0x58] sm:$0xff]  ;;  %v295_v9 = vld [vmem:[%s1310_s14 + $0x50] sm:$0xff] }
  0x23   : > { %437 = vmatpush1.msra.mxu0 %v319_v25  ;;  %669 = vmatpush1.msra.mxu1 %v591_v47  ;;  %v298_v10 = vld [vmem:[%s1310_s14 + $0x68] sm:$0xff]  ;;  %v297_v11 = vld [vmem:[%s1310_s14 + $0x60] sm:$0xff]  ;;  %v300_v12 = vld [vmem:[%s1310_s14 + $0x78] sm:$0xff] }
  0x24   : > { %438 = vmatprep.subr.mxu0 %v318_v26  ;;  %670 = vmatprep.subr.mxu1 %v1211_v5  ;;  %v299_v13 = vld [vmem:[%s1310_s14 + $0x70] sm:$0xff]  ;;  %v302_v14 = vld [vmem:[%s1310_s14 + $0x88] sm:$0xff]  ;;  %v301_v15 = vld [vmem:[%s1310_s14 + $0x80] sm:$0xff] }
  0x25   : > { %439 = vmatpush1.msra.mxu0 %v317_v27  ;;  %671 = vmatpush1.msra.mxu1 %v590_v50  ;;  %v304_v16 = vld [vmem:[%s1310_s14 + $0x98] sm:$0xff]  ;;  %v303_v17 = vld [vmem:[%s1310_s14 + $0x90] sm:$0xff]  ;;  %v306_v18 = vld [vmem:[%s1310_s14 + $0xa8] sm:$0xff] }
  0x26   : > { %440 = vmatprep.subr.mxu0 %v316_v30  ;;  %672 = vmatprep.subr.mxu1 %v1211_v5  ;;  %v305_v19 = vld [vmem:[%s1310_s14 + $0xa0] sm:$0xff]  ;;  %v308_v20 = vld [vmem:[%s1310_s14 + $0xb8] sm:$0xff]  ;;  %v307_v21 = vld [vmem:[%s1310_s14 + $0xb0] sm:$0xff] }
  0x27   : > { %441 = vmatpush1.msra.mxu0 %v315_v31  ;;  %673 = vmatpush1.msra.mxu1 %v589_v53  ;;  %v310_v22 = vld [vmem:[%s1310_s14 + $0xc8] sm:$0xff]  ;;  %v309_v23 = vld [vmem:[%s1310_s14 + $0xc0] sm:$0xff]  ;;  %v602_v24 = vld [vmem:[%s1766_s3 + $0x98] sm:$0x7f] }
  0x28   : > { %442 = vmatprep.subr.mxu0 %v314_v33  ;;  %674 = vmatprep.subr.mxu1 %v1211_v5  ;;  %v601_v25 = vld [vmem:[%s1766_s3 + $0x90] sm:$0xff]  ;;  %v600_v26 = vld [vmem:[%s1766_s3 + $0x88] sm:$0xff]  ;;  %v599_v27 = vld [vmem:[%s1766_s3 + $0x80] sm:$0xff] }
  0x29   : > { %443 = vmatpush1.msra.mxu0 %v313_v34  ;;  %675 = vmatpush1.msra.mxu1 %v588_v56  ;;  %v812_v28 = vld [vmem:[%s1768_s5 + $0x78] sm:$0xff]  ;;  %v1528_v29 = vld [vmem:[%s1768_s5 + $0x70] sm:$0xff]  ;;  %v1534_v30 = vld [vmem:[%s1768_s5 + $0x68] sm:$0xff] }
  0x2a   : > { %444 = vmatprep.subr.mxu0 %v312_v36  ;;  %676 = vmatprep.subr.mxu1 %v1211_v5  ;;  %v1541_v31 = vld [vmem:[%s1768_s5 + $0x60] sm:$0xff]  ;;  %v1548_v32 = vld [vmem:[%s1768_s5 + $0x58] sm:$0xff]  ;;  %v1555_v33 = vld [vmem:[%s1768_s5 + $0x50] sm:$0xff] }
  0x2b   : > { %445 = vmatpush1.msra.mxu0 %v311_v37  ;;  %677 = vmatpush1.msra.mxu1 %v587_v59  ;;  %v1562_v34 = vld [vmem:[%s1768_s5 + $0x48] sm:$0xff]  ;;  %v1569_v35 = vld [vmem:[%s1768_s5 + $0x40] sm:$0xff]  ;;  %v1576_v36 = vld [vmem:[%s1768_s5 + $0x38] sm:$0xff] }
  0x2c   : > { %1027 = vmatprep.subr.msk.mxu0 %vm407_vm1, %v354_v39  ;;  %678 = vmatprep.subr.mxu1 %v1211_v5  ;;  %v1583_v37 = vld [vmem:[%s1768_s5 + $0x30] sm:$0xff]  ;;  %v1590_v38 = vld [vmem:[%s1768_s5 + $0x28] sm:$0xff]  ;;  %v1597_v39 = vld [vmem:[%s1768_s5 + $0x20] sm:$0xff] }
  0x2d   : > { %1028 = vmatpush2.msk.msra.mxu0 %vm407_vm1, %v353_v40  ;;  %679 = vmatpush1.msra.mxu1 %v586_v60  ;;  %v1604_v40 = vld [vmem:[%s1768_s5 + $0x18] sm:$0xff]  ;;  %v355_v44 = vld [vmem:[%s1765_s2] sm:$0x3] }
  0x2e   : > { %468 = vmatprep.subr.mxu0 %v352_v42  ;;  %680 = vmatprep.subr.mxu1 %v1211_v5  ;;  %v358_v42 = vshrl.u32 %v357_v41, 7 }
  0x2f   : > { %469 = vmatpush2.msra.mxu0 %v351_v43  ;;  %681 = vmatpush1.msra.mxu1 %v585_v63 }
  0x30   : > { %470 = vmatprep.subr.mxu0 %v350_v45  ;;  %682 = vmatprep.subr.mxu1 %v1211_v5  ;;  %v359_v43 = vsub.s32 0, %v358_v42  ;;  %v363_v45 = vsub.s32 1, %v358_v42 }
  0x31   : > { %471 = vmatpush2.msra.mxu0 %v349_v46  ;;  %683 = vmatpush1.msra.mxu1 %v584_v0 }
  0x32   : > { %472 = vmatprep.subr.mxu0 %v348_v48  ;;  %684 = vmatprep.subr.mxu1 %v1211_v5  ;;  %v1613_v46 = vrot.slane %v355_v44, %v359_v43  ;;  %v1615_v47 = vrot.slane %v355_v44, %v363_v45 }
  0x33   : > { %473 = vmatpush2.msra.mxu0 %v347_v49  ;;  %685 = vmatpush1.msra.mxu1 %v583_v3 }
  0x34   : > { %474 = vmatprep.subr.mxu0 %v346_v51  ;;  %710 = vmatprep.subr.mxu1 %v1211_v5 }
  0x35   : > { %475 = vmatpush2.msra.mxu0 %v345_v52  ;;  %1043 = vmatpush2.msk.msra.mxu1 %vm650_vm2, %v602_v24 }
  0x36   : > { %476 = vmatprep.subr.mxu0 %v344_v54  ;;  %712 = vmatprep.subr.mxu1 %v1211_v5 }
  0x37   : > { %477 = vmatpush2.msra.mxu0 %v343_v55  ;;  %713 = vmatpush2.msra.mxu1 %v601_v25 }
  0x38   : > { %479 = vmatmul.mubr.f32.vlgmr.msra.gmra.mxu0 %v285_v57  ;;  %1090 = vmatprep.subr.mxu0 %v1211_v5 }
  0x39   : > { %1030 = vmatprep.mubr.msk.f32.mxu0 %vm367_vm0, %v288_v58  ;;  %714 = vmatprep.subr.mxu1 %v1211_v5 }
  0x3a   : > { %715 = vmatpush2.msra.mxu1 %v600_v26  ;;  %1091 = vmatpush3.msra.mxu0 %v812_v28 }
  0x3b   : > { %716 = vmatprep.subr.mxu1 %v1211_v5  ;;  %1092 = vmatprep.subr.mxu0 %v1211_v5 }
  0x3c   : > { %485 = vmatmul.mubr.f32.gmra.mxu0 %v287_v61  ;;  %717 = vmatpush2.msra.mxu1 %v599_v27 }
  0x3d   : > { %1031 = vmatprep.mubr.msk.f32.mxu0 %vm367_vm0, %v290_v62  ;;  %1161 = vmatprep.subr.mxu1 %v1211_v5 }
  0x3e   : > { %1093 = vmatpush3.msra.mxu0 %v1528_v29 }
  0x3f   : > { %1094 = vmatprep.subr.mxu0 %v1211_v5 }
  0x40   : > { %491 = vmatmul.mubr.f32.gmra.mxu0 %v289_v1 }
  0x41   : > { %1032 = vmatprep.mubr.msk.f32.mxu0 %vm367_vm0, %v292_v2  ;;  %1095 = vmatpush3.msra.mxu0 %v1534_v30 }
  0x42   : > { %1096 = vmatprep.subr.mxu0 %v1211_v5 }
  0x43   : > { %1097 = vmatpush3.msra.mxu0 %v1541_v31 }
  0x44   : > { %497 = vmatmul.mubr.f32.gmra.mxu0 %v291_v4  ;;  %1098 = vmatprep.subr.mxu0 %v1211_v5 }
  0x45   : > { %1033 = vmatprep.mubr.msk.f32.mxu0 %vm367_vm0, %v294_v6  ;;  %1099 = vmatpush3.msra.mxu0 %v1548_v32 }
  0x46   : > { %1100 = vmatprep.subr.mxu0 %v1211_v5 }
  0x47   : > { %1101 = vmatpush3.msra.mxu0 %v1555_v33 }
  0x48   : > { %503 = vmatmul.mubr.f32.gmra.mxu0 %v293_v7  ;;  %1102 = vmatprep.subr.mxu0 %v1211_v5 }
  0x49   : > { %1034 = vmatprep.mubr.msk.f32.mxu0 %vm367_vm0, %v296_v8  ;;  %1103 = vmatpush3.msra.mxu0 %v1562_v34 }
  0x4a   : > { %1104 = vmatprep.subr.mxu0 %v1211_v5 }
  0x4b   : > { %1105 = vmatpush3.msra.mxu0 %v1569_v35 }
  0x4c   : > { %509 = vmatmul.mubr.f32.gmra.mxu0 %v295_v9  ;;  %1106 = vmatprep.subr.mxu0 %v1211_v5 }
  0x4d   : > { %1035 = vmatprep.mubr.msk.f32.mxu0 %vm367_vm0, %v298_v10  ;;  %1107 = vmatpush3.msra.mxu0 %v1576_v36 }
  0x4e   : > { %1108 = vmatprep.subr.mxu0 %v1211_v5 }
  0x4f   : > { %1109 = vmatpush3.msra.mxu0 %v1583_v37 }
  0x50   : > { %515 = vmatmul.mubr.f32.gmra.mxu0 %v297_v11  ;;  %1110 = vmatprep.subr.mxu0 %v1211_v5 }
  0x51   : > { %1036 = vmatprep.mubr.msk.f32.mxu0 %vm367_vm0, %v300_v12  ;;  %1111 = vmatpush3.msra.mxu0 %v1590_v38 }
  0x52   : > { %1112 = vmatprep.subr.mxu0 %v1211_v5 }
  0x53   : > { %1113 = vmatpush3.msra.mxu0 %v1597_v39 }
  0x54   : > { %521 = vmatmul.mubr.f32.gmra.mxu0 %v299_v13  ;;  %1114 = vmatprep.subr.mxu0 %v1211_v5 }
  0x55   : > { %1037 = vmatprep.mubr.msk.f32.mxu0 %vm367_vm0, %v302_v14  ;;  %1115 = vmatpush3.msra.mxu0 %v1604_v40 }
  0x56   : > { %1116 = vmatprep.subr.mxu0 %v1211_v5 }
  0x58   : > { %527 = vmatmul.mubr.f32.gmra.mxu0 %v301_v15 }
  0x59   : > { %1038 = vmatprep.mubr.msk.f32.mxu0 %vm367_vm0, %v304_v16 }
  0x5c   : > { %533 = vmatmul.mubr.f32.gmra.mxu0 %v303_v17 }
  0x5d   : > { %1039 = vmatprep.mubr.msk.f32.mxu0 %vm367_vm0, %v306_v18 }
  0x60   : > { %539 = vmatmul.mubr.f32.gmra.mxu0 %v305_v19 }
  0x61   : > { %1040 = vmatprep.mubr.msk.f32.mxu0 %vm367_vm0, %v308_v20 }
  0x64   : > { %545 = vmatmul.mubr.f32.gmra.mxu0 %v307_v21 }
  0x65   : > { %1041 = vmatprep.mubr.msk.f32.mxu0 %vm367_vm0, %v310_v22 }
  0x68   : > { %551 = vmatmul.mubr.f32.gmra.mxu0 %v309_v23 }
  0x69   : > { %1122 = vmatprep.mubr.msk.f32.mxu0 %vm1212_vm4, %v1211_v5 }
  0xf8   : > { %v480_v48 = vpop.f32.mrf.mxu0 }
  0xf9   : > { %v481_v49 = vadd.f32 %v480_v48, %v1613_v46 }
  0xfa   : > { %v482_v50 = vpop.f32.mrf.mxu0 }
  0xfb   : > { %v483_v51 = vadd.f32 %v482_v50, %v1615_v47  ;;  %v557_v54 = vmax.f32 %v481_v49, 0.0 }
  0xfc   : > { %v486_v52 = vpop.f32.mrf.mxu0 }
  0xfd   : > { %v558_v53 = vmax.f32 %v483_v51, 0.0  ;;  %v487_v55 = vadd.f32 %v486_v52, %v1613_v46 }
  0xfe   : > { %v488_v56 = vpop.f32.mrf.mxu0 }
  0xff   : > { %v489_v57 = vadd.f32 %v488_v56, %v1615_v47  ;;  %1044 = vmatprep.mubr.msk.f32.mxu1 %vm610_vm3, %v558_v53  ;;  %v559_v60 = vmax.f32 %v487_v55, 0.0 }
 0x100   : > { %v492_v58 = vpop.f32.mrf.mxu0  ;;  %719 = vmatmul.mubr.f32.vlgmr.msra.gmra.mxu1 %v557_v54 }
 0x101   : > { %v560_v59 = vmax.f32 %v489_v57, 0.0  ;;  %1177 = vmatpush3.msra.mxu1 %v812_v28  ;;  %v493_v61 = vadd.f32 %v492_v58, %v1613_v46 }
 0x102   : > { %v494_v62 = vpop.f32.mrf.mxu0  ;;  %1162 = vmatprep.subr.mxu1 %v1211_v5 }
 0x103   : > { %v495_v63 = vadd.f32 %v494_v62, %v1615_v47  ;;  %1045 = vmatprep.mubr.msk.f32.mxu1 %vm610_vm3, %v560_v59  ;;  %1178 = vmatpush3.msra.mxu1 %v1528_v29  ;;  %v561_v2 = vmax.f32 %v493_v61, 0.0 }
 0x104   : > { %v498_v0 = vpop.f32.mrf.mxu0  ;;  %724 = vmatmul.mubr.f32.gmra.mxu1 %v559_v60  ;;  %1163 = vmatprep.subr.mxu1 %v1211_v5 }
 0x105   : > { %v562_v1 = vmax.f32 %v495_v63, 0.0  ;;  %1179 = vmatpush3.msra.mxu1 %v1534_v30  ;;  %v499_v3 = vadd.f32 %v498_v0, %v1613_v46 }
 0x106   : > { %v500_v4 = vpop.f32.mrf.mxu0  ;;  %1164 = vmatprep.subr.mxu1 %v1211_v5 }
 0x107   : > { %v501_v6 = vadd.f32 %v500_v4, %v1615_v47  ;;  %1046 = vmatprep.mubr.msk.f32.mxu1 %vm610_vm3, %v562_v1  ;;  %1180 = vmatpush3.msra.mxu1 %v1541_v31  ;;  %v563_v9 = vmax.f32 %v499_v3, 0.0  ;;  %v799_v1 = vld [vmem:[%s1768_s5 + $0x10] sm:$0xff] }
 0x108   : > { %v504_v7 = vpop.f32.mrf.mxu0  ;;  %729 = vmatmul.mubr.f32.gmra.mxu1 %v561_v2  ;;  %1165 = vmatprep.subr.mxu1 %v1211_v5  ;;  %v1701_v2 = vld [vmem:[%s1767_s4] ss:$0 sm:$0xff] }
 0x109   : > { %v564_v8 = vmax.f32 %v501_v6, 0.0  ;;  %1181 = vmatpush3.msra.mxu1 %v1548_v32  ;;  %v505_v10 = vadd.f32 %v504_v7, %v1613_v46  ;;  %1117 = vmatpush3.msra.mxu0 %v799_v1 }
 0x10a   : > { %v506_v11 = vpop.f32.mrf.mxu0  ;;  %1166 = vmatprep.subr.mxu1 %v1211_v5  ;;  %1118 = vmatprep.subr.mxu0 %v1211_v5 }
 0x10b   : > { %v507_v12 = vadd.f32 %v506_v11, %v1615_v47  ;;  %1047 = vmatprep.mubr.msk.f32.mxu1 %vm610_vm3, %v564_v8  ;;  %1182 = vmatpush3.msra.mxu1 %v1555_v33  ;;  %v565_v15 = vmax.f32 %v505_v10, 0.0 }
 0x10c   : > { %v510_v13 = vpop.f32.mrf.mxu0  ;;  %734 = vmatmul.mubr.f32.gmra.mxu1 %v563_v9  ;;  %1167 = vmatprep.subr.mxu1 %v1211_v5 }
 0x10d   : > { %v566_v14 = vmax.f32 %v507_v12, 0.0  ;;  %1183 = vmatpush3.msra.mxu1 %v1562_v34  ;;  %v511_v16 = vadd.f32 %v510_v13, %v1613_v46 }
 0x10e   : > { %v512_v17 = vpop.f32.mrf.mxu0  ;;  %1168 = vmatprep.subr.mxu1 %v1211_v5 }
 0x10f   : > { %v513_v18 = vadd.f32 %v512_v17, %v1615_v47  ;;  %1048 = vmatprep.mubr.msk.f32.mxu1 %vm610_vm3, %v566_v14  ;;  %1184 = vmatpush3.msra.mxu1 %v1569_v35  ;;  %v567_v21 = vmax.f32 %v511_v16, 0.0 }
 0x110   : > { %v516_v19 = vpop.f32.mrf.mxu0  ;;  %739 = vmatmul.mubr.f32.gmra.mxu1 %v565_v15  ;;  %1169 = vmatprep.subr.mxu1 %v1211_v5 }
 0x111   : > { %v568_v20 = vmax.f32 %v513_v18, 0.0  ;;  %1185 = vmatpush3.msra.mxu1 %v1576_v36  ;;  %v517_v22 = vadd.f32 %v516_v19, %v1613_v46 }
 0x112   : > { %v518_v23 = vpop.f32.mrf.mxu0  ;;  %1170 = vmatprep.subr.mxu1 %v1211_v5 }
 0x113   : > { %v519_v24 = vadd.f32 %v518_v23, %v1615_v47  ;;  %1049 = vmatprep.mubr.msk.f32.mxu1 %vm610_vm3, %v568_v20  ;;  %1186 = vmatpush3.msra.mxu1 %v1583_v37  ;;  %v569_v27 = vmax.f32 %v517_v22, 0.0 }
 0x114   : > { %v522_v25 = vpop.f32.mrf.mxu0  ;;  %744 = vmatmul.mubr.f32.gmra.mxu1 %v567_v21  ;;  %1171 = vmatprep.subr.mxu1 %v1211_v5 }
 0x115   : > { %v570_v26 = vmax.f32 %v519_v24, 0.0  ;;  %1187 = vmatpush3.msra.mxu1 %v1590_v38  ;;  %v523_v28 = vadd.f32 %v522_v25, %v1613_v46 }
 0x116   : > { %v524_v29 = vpop.f32.mrf.mxu0  ;;  %1172 = vmatprep.subr.mxu1 %v1211_v5 }
 0x117   : > { %v525_v30 = vadd.f32 %v524_v29, %v1615_v47  ;;  %1050 = vmatprep.mubr.msk.f32.mxu1 %vm610_vm3, %v570_v26  ;;  %1188 = vmatpush3.msra.mxu1 %v1597_v39  ;;  %v571_v33 = vmax.f32 %v523_v28, 0.0 }
 0x118   : > { %v528_v31 = vpop.f32.mrf.mxu0  ;;  %749 = vmatmul.mubr.f32.gmra.mxu1 %v569_v27  ;;  %1173 = vmatprep.subr.mxu1 %v1211_v5 }
 0x119   : > { %v572_v32 = vmax.f32 %v525_v30, 0.0  ;;  %1189 = vmatpush3.msra.mxu1 %v1604_v40  ;;  %v529_v34 = vadd.f32 %v528_v31, %v1613_v46 }
 0x11a   : > { %v530_v35 = vpop.f32.mrf.mxu0  ;;  %1174 = vmatprep.subr.mxu1 %v1211_v5 }
 0x11b   : > { %v531_v36 = vadd.f32 %v530_v35, %v1615_v47  ;;  %1051 = vmatprep.mubr.msk.f32.mxu1 %vm610_vm3, %v572_v32  ;;  %v573_v39 = vmax.f32 %v529_v34, 0.0  ;;  %1190 = vmatpush3.msra.mxu1 %v799_v1 }
 0x11c   : > { %v534_v37 = vpop.f32.mrf.mxu0  ;;  %754 = vmatmul.mubr.f32.gmra.mxu1 %v571_v33  ;;  %1175 = vmatprep.subr.mxu1 %v1211_v5 }
 0x11d   : > { %v574_v38 = vmax.f32 %v531_v36, 0.0  ;;  %v535_v41 = vadd.f32 %v534_v37, %v1613_v46 }
 0x11e   : > { %v536_v42 = vpop.f32.mrf.mxu0 }
 0x11f   : > { %v537_v43 = vadd.f32 %v536_v42, %v1615_v47  ;;  %1052 = vmatprep.mubr.msk.f32.mxu1 %vm610_vm3, %v574_v38  ;;  %v575_v45 = vmax.f32 %v535_v41, 0.0 }
 0x120   : > { %v540_v40 = vpop.f32.mrf.mxu0  ;;  %759 = vmatmul.mubr.f32.gmra.mxu1 %v573_v39 }
 0x121   : > { %v576_v44 = vmax.f32 %v537_v43, 0.0  ;;  %v541_v48 = vadd.f32 %v540_v40, %v1613_v46 }
 0x122   : > { %v542_v49 = vpop.f32.mrf.mxu0 }
 0x123   : > { %v543_v50 = vadd.f32 %v542_v49, %v1615_v47  ;;  %1053 = vmatprep.mubr.msk.f32.mxu1 %vm610_vm3, %v576_v44  ;;  %v577_v53 = vmax.f32 %v541_v48, 0.0 }
 0x124   : > { %v546_v51 = vpop.f32.mrf.mxu0  ;;  %764 = vmatmul.mubr.f32.gmra.mxu1 %v575_v45 }
 0x125   : > { %v578_v52 = vmax.f32 %v543_v50, 0.0  ;;  %v547_v54 = vadd.f32 %v546_v51, %v1613_v46 }
 0x126   : > { %v548_v55 = vpop.f32.mrf.mxu0 }
 0x127   : > { %v549_v56 = vadd.f32 %v548_v55, %v1615_v47  ;;  %1054 = vmatprep.mubr.msk.f32.mxu1 %vm610_vm3, %v578_v52  ;;  %v579_v59 = vmax.f32 %v547_v54, 0.0 }
 0x128   : > { %v552_v57 = vpop.f32.mrf.mxu0  ;;  %769 = vmatmul.mubr.f32.gmra.mxu1 %v577_v53 }
 0x129   : > { %v580_v58 = vmax.f32 %v549_v56, 0.0  ;;  %v553_v60 = vadd.f32 %v552_v57, %v1613_v46  ;;  %v798_v46 = vld [vmem:[%s1768_s5 + $0x8] sm:$0xff] }
 0x12a   : > { %v554_v61 = vpop.f32.mrf.mxu0  ;;  %1119 = vmatpush3.msra.mxu0 %v798_v46  ;;  %1191 = vmatpush3.msra.mxu1 %v798_v46 }
 0x12b   : > { %v555_v62 = vadd.f32 %v554_v61, %v1615_v47  ;;  %1055 = vmatprep.mubr.msk.f32.mxu1 %vm610_vm3, %v580_v58  ;;  %v581_v0 = vmax.f32 %v553_v60, 0.0  ;;  %1120 = vmatprep.subr.mxu0 %v1211_v5  ;;  %v797_v47 = vld [vmem:[%s1768_s5] sm:$0xff] }
 0x12c   : > { %774 = vmatmul.mubr.f32.gmra.mxu1 %v579_v59  ;;  %1176 = vmatprep.subr.mxu1 %v1211_v5  ;;  %v1057_v58 = vld [vmem:[%s1769_s6] ss:$0 sm:$0xff] }
 0x12d   : > { %v582_v63 = vmax.f32 %v555_v62, 0.0  ;;  %1121 = vmatpush3.msra.mxu0 %v797_v47  ;;  %1192 = vmatpush3.msra.mxu1 %v797_v47 }
 0x12f   : > { %1056 = vmatprep.mubr.msk.f32.mxu1 %vm610_vm3, %v582_v63 }
 0x130   : > { %779 = vmatmul.mubr.f32.gmra.mxu1 %v581_v0 }
 0x131   : > { %1140 = vmatprep.mubr.msk.f32.mxu1 %vm1212_vm4, %v1211_v5 }
 0x1c0   : > { %v720_v3 = vpop.f32.mrf.mxu1 }
 0x1c1   : > { %v721_v4 = vadd.f32 %v1701_v2, %v720_v3 }
 0x1c2   : > { %v722_v6 = vpop.f32.mrf.mxu1 }
 0x1c3   : > { %v784_v7 = vmax.f32 %v721_v4, 0.0 }
 0x1c4   : > { %v725_v8 = vpop.f32.mrf.mxu1 }
 0x1c5   : > { %v726_v9 = vadd.f32 %v1701_v2, %v725_v8  ;;  %1123 = vmatmul.mubr.f32.vlgmr.msra.gmra.mxu0 %v784_v7 }
 0x1c6   : > { %v727_v10 = vpop.f32.mrf.mxu1  ;;  %1125 = vmatprep.mubr.msk.f32.mxu0 %vm1212_vm4, %v1211_v5 }
 0x1c7   : > { %v785_v11 = vmax.f32 %v726_v9, 0.0 }
 0x1c8   : > { %v730_v12 = vpop.f32.mrf.mxu1 }
 0x1c9   : > { %v731_v13 = vadd.f32 %v1701_v2, %v730_v12  ;;  %1126 = vmatmul.mubr.f32.gmra.mxu0 %v785_v11 }
 0x1ca   : > { %v732_v14 = vpop.f32.mrf.mxu1  ;;  %1128 = vmatprep.mubr.msk.f32.mxu0 %vm1212_vm4, %v1211_v5 }
 0x1cb   : > { %v786_v15 = vmax.f32 %v731_v13, 0.0 }
 0x1cc   : > { %v735_v16 = vpop.f32.mrf.mxu1 }
 0x1cd   : > { %v736_v17 = vadd.f32 %v1701_v2, %v735_v16  ;;  %1129 = vmatmul.mubr.f32.gmra.mxu0 %v786_v15 }
 0x1ce   : > { %v737_v18 = vpop.f32.mrf.mxu1  ;;  %1131 = vmatprep.mubr.msk.f32.mxu0 %vm1212_vm4, %v1211_v5 }
 0x1cf   : > { %v787_v19 = vmax.f32 %v736_v17, 0.0 }
 0x1d0   : > { %v740_v20 = vpop.f32.mrf.mxu1 }
 0x1d1   : > { %v741_v21 = vadd.f32 %v1701_v2, %v740_v20  ;;  %1132 = vmatmul.mubr.f32.gmra.mxu0 %v787_v19 }
 0x1d2   : > { %v742_v22 = vpop.f32.mrf.mxu1  ;;  %1134 = vmatprep.mubr.msk.f32.mxu0 %vm1212_vm4, %v1211_v5 }
 0x1d3   : > { %v788_v23 = vmax.f32 %v741_v21, 0.0 }
 0x1d4   : > { %v745_v24 = vpop.f32.mrf.mxu1 }
 0x1d5   : > { %v746_v25 = vadd.f32 %v1701_v2, %v745_v24  ;;  %1135 = vmatmul.mubr.f32.gmra.mxu0 %v788_v23 }
 0x1d6   : > { %v747_v26 = vpop.f32.mrf.mxu1  ;;  %1137 = vmatprep.mubr.msk.f32.mxu0 %vm1212_vm4, %v1211_v5 }
 0x1d7   : > { %v789_v27 = vmax.f32 %v746_v25, 0.0 }
 0x1d8   : > { %v750_v28 = vpop.f32.mrf.mxu1 }
 0x1d9   : > { %v751_v29 = vadd.f32 %v1701_v2, %v750_v28  ;;  %1138 = vmatmul.mubr.f32.gmra.mxu0 %v789_v27 }
 0x1da   : > { %v752_v30 = vpop.f32.mrf.mxu1 }
 0x1db   : > { %v790_v31 = vmax.f32 %v751_v29, 0.0 }
 0x1dc   : > { %v755_v32 = vpop.f32.mrf.mxu1 }
 0x1dd   : > { %v756_v33 = vadd.f32 %v1701_v2, %v755_v32  ;;  %1141 = vmatmul.mubr.f32.vlgmr.msra.gmra.mxu1 %v790_v31 }
 0x1de   : > { %v757_v34 = vpop.f32.mrf.mxu1  ;;  %1143 = vmatprep.mubr.msk.f32.mxu1 %vm1212_vm4, %v1211_v5 }
 0x1df   : > { %v791_v35 = vmax.f32 %v756_v33, 0.0 }
 0x1e0   : > { %v760_v36 = vpop.f32.mrf.mxu1 }
 0x1e1   : > { %v761_v37 = vadd.f32 %v1701_v2, %v760_v36  ;;  %1144 = vmatmul.mubr.f32.gmra.mxu1 %v791_v35 }
 0x1e2   : > { %v762_v38 = vpop.f32.mrf.mxu1  ;;  %1146 = vmatprep.mubr.msk.f32.mxu1 %vm1212_vm4, %v1211_v5 }
 0x1e3   : > { %v792_v39 = vmax.f32 %v761_v37, 0.0 }
 0x1e4   : > { %v765_v41 = vpop.f32.mrf.mxu1 }
 0x1e5   : > { %v766_v42 = vadd.f32 %v1701_v2, %v765_v41  ;;  %1147 = vmatmul.mubr.f32.gmra.mxu1 %v792_v39 }
 0x1e6   : > { %v767_v43 = vpop.f32.mrf.mxu1  ;;  %1149 = vmatprep.mubr.msk.f32.mxu1 %vm1212_vm4, %v1211_v5 }
 0x1e7   : > { %v793_v40 = vmax.f32 %v766_v42, 0.0 }
 0x1e8   : > { %v770_v44 = vpop.f32.mrf.mxu1 }
 0x1e9   : > { %v771_v45 = vadd.f32 %v1701_v2, %v770_v44  ;;  %1150 = vmatmul.mubr.f32.gmra.mxu1 %v793_v40 }
 0x1ea   : > { %v772_v48 = vpop.f32.mrf.mxu1  ;;  %1152 = vmatprep.mubr.msk.f32.mxu1 %vm1212_vm4, %v1211_v5 }
 0x1eb   : > { %v794_v49 = vmax.f32 %v771_v45, 0.0 }
 0x1ec   : > { %v775_v50 = vpop.f32.mrf.mxu1 }
 0x1ed   : > { %v776_v51 = vadd.f32 %v1701_v2, %v775_v50  ;;  %1153 = vmatmul.mubr.f32.gmra.mxu1 %v794_v49 }
 0x1ee   : > { %v777_v52 = vpop.f32.mrf.mxu1  ;;  %1155 = vmatprep.mubr.msk.f32.mxu1 %vm1212_vm4, %v1211_v5 }
 0x1ef   : > { %v795_v53 = vmax.f32 %v776_v51, 0.0 }
 0x1f0   : > { %v780_v54 = vpop.f32.mrf.mxu1 }
 0x1f1   : > { %v781_v55 = vadd.f32 %v1701_v2, %v780_v54  ;;  %1156 = vmatmul.mubr.f32.gmra.mxu1 %v795_v53 }
 0x1f2   : > { %v782_v56 = vpop.f32.mrf.mxu1  ;;  %1158 = vmatprep.mubr.msk.f32.mxu1 %vm1212_vm4, %v1211_v5 }
 0x1f3   : > { %v796_v57 = vmax.f32 %v781_v55, 0.0 }
 0x1f5   : > { %1159 = vmatmul.mubr.f32.gmra.mxu1 %v796_v57 }
 0x285   : > { %v886_v59 = vpop.f32.mrf.mxu0 }
 0x286   : > { %v887_v60 = vadd.f32 %v1057_v58, %v886_v59 }
 0x287   : > { %v1124_v61 = vpop.f32.mrf.mxu0 }
 0x288   : > { %950 = vst [vmem:[%s1745_s12] sm:$0xff] %v887_v60 }
 0x289   : > { %v891_v5 = vpop.f32.mrf.mxu0 }
 0x28a   : > { %v892_v62 = vadd.f32 %v1057_v58, %v891_v5 }
 0x28b   : > { %v1127_v63 = vpop.f32.mrf.mxu0 }
 0x28c   : > { %951 = vst [vmem:[%s1745_s12 + $0x8] sm:$0xff] %v892_v62 }
 0x28d   : > { %v896_v0 = vpop.f32.mrf.mxu0 }
 0x28e   : > { %v897_v1 = vadd.f32 %v1057_v58, %v896_v0 }
 0x28f   : > { %v1130_v46 = vpop.f32.mrf.mxu0 }
 0x290   : > { %952 = vst [vmem:[%s1745_s12 + $0x10] sm:$0xff] %v897_v1 }
 0x291   : > { %v901_v47 = vpop.f32.mrf.mxu0 }
 0x292   : > { %v902_v2 = vadd.f32 %v1057_v58, %v901_v47 }
 0x293   : > { %v1133_v3 = vpop.f32.mrf.mxu0 }
 0x294   : > { %953 = vst [vmem:[%s1745_s12 + $0x18] sm:$0xff] %v902_v2 }
 0x295   : > { %v906_v4 = vpop.f32.mrf.mxu0 }
 0x296   : > { %v907_v6 = vadd.f32 %v1057_v58, %v906_v4 }
 0x297   : > { %v1136_v7 = vpop.f32.mrf.mxu0 }
 0x298   : > { %954 = vst [vmem:[%s1745_s12 + $0x20] sm:$0xff] %v907_v6 }
 0x299   : > { %v911_v8 = vpop.f32.mrf.mxu0 }
 0x29a   : > { %v912_v9 = vadd.f32 %v1057_v58, %v911_v8 }
 0x29b   : > { %v1139_v10 = vpop.f32.mrf.mxu0 }
 0x29c   : > { %955 = vst [vmem:[%s1745_s12 + $0x28] sm:$0xff] %v912_v9 }
 0x29d   : > { %v916_v11 = vpop.f32.mrf.mxu1 }
 0x29e   : > { %v917_v12 = vadd.f32 %v1057_v58, %v916_v11 }
 0x29f   : > { %v1142_v13 = vpop.f32.mrf.mxu1 }
 0x2a0   : > { %956 = vst [vmem:[%s1745_s12 + $0x30] sm:$0xff] %v917_v12 }
 0x2a1   : > { %v921_v14 = vpop.f32.mrf.mxu1 }
 0x2a2   : > { %v922_v15 = vadd.f32 %v1057_v58, %v921_v14 }
 0x2a3   : > { %v1145_v16 = vpop.f32.mrf.mxu1 }
 0x2a4   : > { %957 = vst [vmem:[%s1745_s12 + $0x38] sm:$0xff] %v922_v15 }
 0x2a5   : > { %v926_v17 = vpop.f32.mrf.mxu1 }
 0x2a6   : > { %v927_v18 = vadd.f32 %v1057_v58, %v926_v17 }
 0x2a7   : > { %v1148_v19 = vpop.f32.mrf.mxu1 }
 0x2a8   : > { %958 = vst [vmem:[%s1745_s12 + $0x40] sm:$0xff] %v927_v18 }
 0x2a9   : > { %v931_v20 = vpop.f32.mrf.mxu1 }
 0x2aa   : > { %v932_v21 = vadd.f32 %v1057_v58, %v931_v20 }
 0x2ab   : > { %v1151_v22 = vpop.f32.mrf.mxu1 }
 0x2ac   : > { %959 = vst [vmem:[%s1745_s12 + $0x48] sm:$0xff] %v932_v21 }
 0x2ad   : > { %v936_v23 = vpop.f32.mrf.mxu1 }
 0x2ae   : > { %v937_v24 = vadd.f32 %v1057_v58, %v936_v23 }
 0x2af   : > { %v1154_v25 = vpop.f32.mrf.mxu1 }
 0x2b0   : > { %960 = vst [vmem:[%s1745_s12 + $0x50] sm:$0xff] %v937_v24 }
 0x2b1   : > { %v941_v26 = vpop.f32.mrf.mxu1 }
 0x2b2   : > { %v942_v27 = vadd.f32 %v1057_v58, %v941_v26 }
 0x2b3   : > { %v1157_v28 = vpop.f32.mrf.mxu1 }
 0x2b4   : > { %961 = vst [vmem:[%s1745_s12 + $0x58] sm:$0xff] %v942_v27 }
 0x2b5   : > { %v946_v29 = vpop.f32.mrf.mxu1 }
 0x2b6   : > { %v947_v30 = vadd.f32 %v1057_v58, %v946_v29 }
 0x2b7   : > { %v1160_v31 = vpop.f32.mrf.mxu1 }
 0x2b8   : > { %962 = vst [vmem:[%s1745_s12 + $0x60] sm:$0xff] %v947_v30 }
 0x2b9 PF: > { %s17_s24 = sadd.s32 1, %s1209_s24  }
 0x2ba   : > { %p14_p4 = scmp.ge.s32.totalorder %s17_s24, 4  }
 0x2bc   :  { %16 = sbr.rel (!%p14_p4) target bundleno = 1 (0x1), region = 78 }

</bundles_post_ra>
